<compile_context>
chip_gen: v5e
topology: v5e:2x2
jax: 0.10.0
libtpu: 0.0.40
codegen_flags: <defaults>
</compile_context>

<pallas_src>
import jax
import jax.numpy as jnp
from jax.experimental import pallas as pl
from jax.experimental.pallas import tpu as pltpu

_LANE = 128      # vreg lane width
_SUBLANE = 8     # f32 sublane height


def _round_up(x, m):
    return (x + m - 1) // m * m


def _network_kernel(x_ref, w1_ref, b1_ref, w2_ref, b2_ref, o_ref):
    # x_ref : (TB, IN_P)       bf16  flattened input tile
    # w1_ref: (IN_P, FEAT_P)   bf16  feature-extractor weight (pre-transposed)
    # b1_ref: (1, FEAT_P)      f32
    # w2_ref: (FEAT_P, NCLS_P) bf16  fc weight (pre-transposed, lane-padded)
    # b2_ref: (1, NCLS_P)      f32
    # o_ref : (TB, NCLS_P)     f32
    # feature extractor: Linear + ReLU (MXU bf16 matmul, f32 accumulation)
    h = jnp.dot(x_ref[...], w1_ref[...], preferred_element_type=jnp.float32)
    h = jnp.maximum(h + b1_ref[...], 0.0)            # bias + ReLU kept in f32 (VPU)
    # fc head: Linear(256, numclass) with bias
    y = jnp.dot(h.astype(jnp.bfloat16), w2_ref[...],
                preferred_element_type=jnp.float32)
    o_ref[...] = (y + b2_ref[...]).astype(o_ref.dtype)


def network_forward(x_nchw, w1, b1, w2, b2):
    """x_nchw: (B, C, H, W) float32.  Returns (B, numclass) float32."""
    B = x_nchw.shape[0]
    x2d = x_nchw.reshape(B, -1)                      # torch-style .view(B, -1)
    in_dim = x2d.shape[1]
    feat_dim = w1.shape[1]
    ncls = w2.shape[1]

    # --- TPU-friendly padding (zeros, so results are unchanged) ---
    in_p = _round_up(in_dim, _LANE)
    feat_p = _round_up(feat_dim, _LANE)
    ncls_p = _round_up(ncls, _LANE)                  # lane-dense output (>=128)

    tb = 512 if B >= 512 else _round_up(B, _SUBLANE)  # batch tile (sublane mult.)
    b_p = _round_up(B, tb)
    n_btiles = b_p // tb

    x_pad = jnp.zeros((b_p, in_p), jnp.bfloat16).at[:B, :in_dim].set(
        x2d.astype(jnp.bfloat16))
    w1_pad = jnp.zeros((in_p, feat_p), jnp.bfloat16).at[:in_dim, :feat_dim].set(
        w1.astype(jnp.bfloat16))
    b1_pad = jnp.zeros((1, feat_p), jnp.float32).at[0, :feat_dim].set(
        b1.astype(jnp.float32))
    w2_pad = jnp.zeros((feat_p, ncls_p), jnp.bfloat16).at[:feat_dim, :ncls].set(
        w2.astype(jnp.bfloat16))
    b2_pad = jnp.zeros((1, ncls_p), jnp.float32).at[0, :ncls].set(
        b2.astype(jnp.float32))

    out = pl.pallas_call(
        _network_kernel,
        out_shape=jax.ShapeDtypeStruct((b_p, ncls_p), jnp.float32),
        grid_spec=pltpu.PrefetchScalarGridSpec(
            num_scalar_prefetch=0,
            grid=(n_btiles,),
            in_specs=[
                pl.BlockSpec((tb, in_p), lambda i: (i, 0)),        # x: batch-tiled
                pl.BlockSpec((in_p, feat_p), lambda i: (0, 0)),    # w1: resident
                pl.BlockSpec((1, feat_p), lambda i: (0, 0)),       # b1: resident
                pl.BlockSpec((feat_p, ncls_p), lambda i: (0, 0)),  # w2: resident
                pl.BlockSpec((1, ncls_p), lambda i: (0, 0)),       # b2: resident
            ],
            out_specs=pl.BlockSpec((tb, ncls_p), lambda i: (i, 0)),
        ),
        compiler_params=pltpu.CompilerParams(
            dimension_semantics=("parallel",),   # shard batch tiles across TCs (v7x)
        ),
    )(x_pad, w1_pad, b1_pad, w2_pad, b2_pad)

    return out[:B, :ncls]


def _reference(x_nchw, w1, b1, w2, b2):
    # Same math, same bf16 matmul inputs / f32 accumulation, plain XLA.
    B = x_nchw.shape[0]
    x2d = x_nchw.reshape(B, -1)
    h = jnp.dot(x2d.astype(jnp.bfloat16), w1.astype(jnp.bfloat16),
                preferred_element_type=jnp.float32) + b1
    h = jnp.maximum(h, 0.0)
    y = jnp.dot(h.astype(jnp.bfloat16), w2.astype(jnp.bfloat16),
                preferred_element_type=jnp.float32) + b2
    return y


if __name__ == "__main__":
    # Small shapes consistent with the module: input images (2, 4, 16, 16),
    # feature dim 256 (fc in_features), numclass = 10.
    B, C, H, W = 2, 4, 16, 16
    FEAT = 256
    NUMCLASS = 10
    IN = C * H * W

    key = jax.random.PRNGKey(0)
    k_x, k_w1, k_b1, k_w2, k_b2 = jax.random.split(key, 5)

    x = jax.random.normal(k_x, (B, C, H, W), dtype=jnp.float32)
    # feature-extractor stand-in parameters (Linear IN -> 256), stored transposed
    w1 = jax.random.normal(k_w1, (IN, FEAT), dtype=jnp.float32) * 0.02
    b1 = jax.random.normal(k_b1, (FEAT,), dtype=jnp.float32) * 0.02
    # fc = nn.Linear(256, numclass, bias=True), stored transposed (256, numclass)
    w2 = jax.random.normal(k_w2, (FEAT, NUMCLASS), dtype=jnp.float32) * 0.02
    b2 = jax.random.normal(k_b2, (NUMCLASS,), dtype=jnp.float32) * 0.02

    out = network_forward(x, w1, b1, w2, b2)
    jax.block_until_ready(out)

    ref = _reference(x, w1, b1, w2, b2)
    assert out.shape == (B, NUMCLASS)
    assert jnp.allclose(out, ref, atol=2e-2, rtol=2e-2), (
        f"max abs err {jnp.max(jnp.abs(out - ref))}")

    print("KERNEL_OK")
</pallas_src>

<mosaic_0001>
module attributes {stable_mosaic.version = 11 : i64} {
  func.func @_network_kernel(%arg0: i32, %arg1: memref<8x1024xbf16, #tpu.memory_space<vmem>>, %arg2: memref<1024x256xbf16, #tpu.memory_space<vmem>>, %arg3: memref<1x256xf32, #tpu.memory_space<vmem>>, %arg4: memref<256x128xbf16, #tpu.memory_space<vmem>>, %arg5: memref<1x128xf32, #tpu.memory_space<vmem>>, %arg6: memref<8x128xf32, #tpu.memory_space<vmem>>) attributes {dimension_semantics = [#tpu.dimension_semantics<parallel>], iteration_bounds = array<i64: 1>, scalar_prefetch = 0 : i64, scratch_operands = 0 : i64, tpu.core_type = #tpu.core_type<tc>, window_params = [{transform_indices = @transform_0, window_bounds = array<i64: 8, 1024>}, {pipeline_mode = #tpu.pipeline_mode<synchronous>, transform_indices = @transform_1, window_bounds = array<i64: 1024, 256>}, {pipeline_mode = #tpu.pipeline_mode<synchronous>, transform_indices = @transform_2, window_bounds = array<i64: 1, 256>}, {pipeline_mode = #tpu.pipeline_mode<synchronous>, transform_indices = @transform_3, window_bounds = array<i64: 256, 128>}, {pipeline_mode = #tpu.pipeline_mode<synchronous>, transform_indices = @transform_4, window_bounds = array<i64: 1, 128>}, {transform_indices = @transform_5, window_bounds = array<i64: 8, 128>}]} {
    %c0 = arith.constant 0 : index
    %c0_0 = arith.constant 0 : index
    %0 = vector.load %arg1[%c0, %c0_0] : memref<8x1024xbf16, #tpu.memory_space<vmem>>, vector<8x1024xbf16>
    %c0_1 = arith.constant 0 : index
    %c0_2 = arith.constant 0 : index
    %1 = vector.load %arg2[%c0_1, %c0_2] : memref<1024x256xbf16, #tpu.memory_space<vmem>>, vector<1024x256xbf16>
    %cst = arith.constant dense<0.000000e+00> : vector<8x256xf32>
    %2 = tpu.matmul %0, %1, %cst {dimension_numbers = #tpu.dot_dimension_numbers<[1], [0], [0], [1], [0, 0, 1, 1], [], []>} : vector<8x1024xbf16>, vector<1024x256xbf16>, vector<8x256xf32> -> vector<8x256xf32>
    %c0_3 = arith.constant 0 : index
    %c0_4 = arith.constant 0 : index
    %3 = vector.load %arg3[%c0_3, %c0_4] : memref<1x256xf32, #tpu.memory_space<vmem>>, vector<1x256xf32>
    %4 = vector.broadcast %3 : vector<1x256xf32> to vector<8x256xf32>
    %5 = arith.addf %2, %4 : vector<8x256xf32>
    %cst_5 = arith.constant 0.000000e+00 : f32
    %6 = vector.broadcast %cst_5 : f32 to vector<8x256xf32>
    %7 = arith.maximumf %5, %6 : vector<8x256xf32>
    %8 = arith.truncf %7 : vector<8x256xf32> to vector<8x256xbf16>
    %c0_6 = arith.constant 0 : index
    %c0_7 = arith.constant 0 : index
    %9 = vector.load %arg4[%c0_6, %c0_7] : memref<256x128xbf16, #tpu.memory_space<vmem>>, vector<256x128xbf16>
    %cst_8 = arith.constant dense<0.000000e+00> : vector<8x128xf32>
    %10 = tpu.matmul %8, %9, %cst_8 {dimension_numbers = #tpu.dot_dimension_numbers<[1], [0], [0], [1], [0, 0, 1, 1], [], []>} : vector<8x256xbf16>, vector<256x128xbf16>, vector<8x128xf32> -> vector<8x128xf32>
    %c0_9 = arith.constant 0 : index
    %c0_10 = arith.constant 0 : index
    %11 = vector.load %arg5[%c0_9, %c0_10] : memref<1x128xf32, #tpu.memory_space<vmem>>, vector<1x128xf32>
    %12 = vector.broadcast %11 : vector<1x128xf32> to vector<8x128xf32>
    %13 = arith.addf %10, %12 : vector<8x128xf32>
    %c0_11 = arith.constant 0 : index
    %c0_12 = arith.constant 0 : index
    %14 = vector.load %arg6[%c0_11, %c0_12] : memref<8x128xf32, #tpu.memory_space<vmem>>, vector<8x128xf32>
    tpu.vector_store %arg6[%c0_11, %c0_12], %13 {strides = array<i32>} : memref<8x128xf32, #tpu.memory_space<vmem>>, vector<8x128xf32>,
    return
  }
  func.func @transform_0(%arg0: i32) -> (i32, i32) {
    %c0_i32 = arith.constant 0 : i32
    %c0_i32_0 = arith.constant 0 : i32
    return %arg0, %c0_i32 : i32, i32
  }
  func.func @transform_1(%arg0: i32) -> (i32, i32) {
    %c0_i32 = arith.constant 0 : i32
    %c0_i32_0 = arith.constant 0 : i32
    %c0_i32_1 = arith.constant 0 : i32
    return %c0_i32, %c0_i32_0 : i32, i32
  }
  func.func @transform_2(%arg0: i32) -> (i32, i32) {
    %c0_i32 = arith.constant 0 : i32
    %c0_i32_0 = arith.constant 0 : i32
    %c0_i32_1 = arith.constant 0 : i32
    return %c0_i32, %c0_i32_0 : i32, i32
  }
  func.func @transform_3(%arg0: i32) -> (i32, i32) {
    %c0_i32 = arith.constant 0 : i32
    %c0_i32_0 = arith.constant 0 : i32
    %c0_i32_1 = arith.constant 0 : i32
    return %c0_i32, %c0_i32_0 : i32, i32
  }
  func.func @transform_4(%arg0: i32) -> (i32, i32) {
    %c0_i32 = arith.constant 0 : i32
    %c0_i32_0 = arith.constant 0 : i32
    %c0_i32_1 = arith.constant 0 : i32
    return %c0_i32, %c0_i32_0 : i32, i32
  }
  func.func @transform_5(%arg0: i32) -> (i32, i32) {
    %c0_i32 = arith.constant 0 : i32
    %c0_i32_0 = arith.constant 0 : i32
    return %arg0, %c0_i32 : i32, i32
  }
}

</mosaic_0001>

<bundles_post_ra>
// kernel: tpu_custom_call.1
= control target key start
LH: loop header
LB: loop body
LE: loop exit
PB: predicated region body
PF: predicated region fallthrough
CT: control target
= control target key end

     0   :  { %10 = vsyncpa [#allocation3], 0  ;;  %s2223_s0 = inlined_call_operand.hbm [shape: bf16[8,1024], index: 0, kind: input, shape index: {}]   ;;  %s2224_s1 = inlined_call_operand.hbm [shape: bf16[1024,256], index: 1, kind: input, shape index: {}]   ;;  %s2225_s2 = inlined_call_operand.hbm [shape: f32[1,256], index: 2, kind: input, shape index: {}]   ;;  %s2226_s3 = inlined_call_operand.hbm [shape: bf16[256,128], index: 3, kind: input, shape index: {}]   ;;  %s2227_s4 = inlined_call_operand.vmem [shape: f32[1,128], index: 4, kind: input, shape index: {}]   ;;  %s2228_s5 = inlined_call_operand.hbm [shape: f32[8,128], index: 5, kind: output, shape index: {}]  }
   0x1   :  { %11 = vsyncpa [#allocation6], 0 }
   0x2   :  { %12 = vsyncpa [#allocation9], 0  ;;  %s29_s20 = sshll.u32 %s2224_s1, 4  ;;  %s30_s20 = int_to_ptr.hbm [resolvable:$true] %s29_s20 }
   0x3   :  { %13 = vsyncpa [#allocation4], 0  ;;  %s2134_s21 = smov [#allocation5]   ;;  %s19_s25 = sshll.u32 %s2223_s0, 4  ;;  %s20_s25 = int_to_ptr.hbm [resolvable:$true] %s19_s25 }
   0x4   :  { %s31_s22 = sshll.u32 %s2134_s21, 4  ;;  %s2135_s26 = smov 128   ;;  %s32_s22 = int_to_ptr.vmem [resolvable:$true] %s31_s22 }
   0x5   :  { %s2136_s27 = smov 8   ;;  %s2137_s28 = smov [#allocation2]  }
   0x6   :  { %37 = dma.hbm_to_vmem [thread:$0]  %s30_s20, 16384, %s32_s22, [#allocation6], %s2135_s26, %s2135_s26, %s2136_s27  }
   0x7   :  { %s21_s29 = sshll.u32 %s2137_s28, 4  ;;  %s43_s7 = sshll.u32 %s2225_s2, 4  ;;  %s22_s29 = int_to_ptr.vmem [resolvable:$true] %s21_s29  ;;  %s44_s7 = int_to_ptr.hbm [resolvable:$true] %s43_s7 }
   0x8   :  { %24 = dma.hbm_to_vmem [thread:$0]  %s20_s25, 512, %s22_s29, [#allocation3]  }
   0x9   :  { %s53_s9 = sshll.u32 %s2226_s3, 4  ;;  %s2138_s10 = smov [#allocation7]   ;;  %s54_s9 = int_to_ptr.hbm [resolvable:$true] %s53_s9 }
   0xa   :  { %s45_s11 = sshll.u32 %s2138_s10, 4  ;;  %s2139_s0 = smov [#allocation8]   ;;  %s46_s11 = int_to_ptr.vmem [resolvable:$true] %s45_s11 }
   0xb   :  { %48 = dma.hbm_to_vmem [thread:$0]  %s44_s7, 32, %s46_s11, [#allocation6]  }
   0xc   :  { %s55_s12 = sshll.u32 %s2139_s0, 4  ;;  %s2140_s13 = smov 64   ;;  %s56_s12 = int_to_ptr.vmem [resolvable:$true] %s55_s12 }
   0xd   :  { %s2141_s14 = smov 4  }
   0xe   :  { %61 = dma.hbm_to_vmem [thread:$0]  %s54_s9, 2048, %s56_s12, [#allocation9], %s2140_s13, %s2140_s13, %s2141_s14  }
   0xf   :  { %2126 = dma.done.wait [#allocation3], 512  }
  0x10   :  { %2127 = vsyncadd [#allocation3], 4294966784 }
  0x11   :  { %2128 = dma.done.wait [#allocation6], 16416  }
  0x12   :  { %2129 = vsyncadd [#allocation6], 4294950880 }
  0x13   :  { %2130 = dma.done.wait [#allocation9], 2048  }
  0x14   :  { %2131 = vsyncadd [#allocation9], 4294965248  ;;  %v1334_v0 = vld [vmem:[#allocation5 + $0x70] sm:$0xf]  ;;  %v1867_v1 = vld [vmem:[#allocation5 + $0x74] sm:$0xf0] }
  0x15   :  { %v1398_v2 = vld [vmem:[#allocation5 + $0xf0] sm:$0xf]  ;;  %v1335_v3 = vor.u32 %v1867_v1, %v1334_v0  ;;  %v1883_v4 = vld [vmem:[#allocation5 + $0xf4] sm:$0xf0]  ;;  %v1326_v11 = vld [vmem:[#allocation5 + $0x60] sm:$0xf] }
  0x16   :  { %v1462_v5 = vld [vmem:[#allocation5 + $0x170] sm:$0xf]  ;;  %v1899_v6 = vld [vmem:[#allocation5 + $0x174] sm:$0xf0]  ;;  %v1399_v7 = vor.u32 %v1883_v4, %v1398_v2  ;;  %v1865_v13 = vld [vmem:[#allocation5 + $0x64] sm:$0xf0] }
  0x17   :  { %v1463_v8 = vor.u32 %v1899_v6, %v1462_v5  ;;  %v1526_v9 = vld [vmem:[#allocation5 + $0x1f0] sm:$0xf]  ;;  %v1915_v10 = vld [vmem:[#allocation5 + $0x1f4] sm:$0xf0]  ;;  %886 = vmatpush.bf16.msra.mxu0 %v1335_v3  ;;  %v1390_v14 = vld [vmem:[#allocation5 + $0xe0] sm:$0xf]  ;;  %v1327_v16 = vor.u32 %v1865_v13, %v1326_v11 }
  0x18   :  { %v1527_v12 = vor.u32 %v1915_v10, %v1526_v9  ;;  %v1881_v15 = vld [vmem:[#allocation5 + $0xe4] sm:$0xf0]  ;;  %899 = vmatpush.bf16.msra.mxu1 %v1399_v7  ;;  %v1454_v18 = vld [vmem:[#allocation5 + $0x160] sm:$0xf]  ;;  %v1318_v23 = vld [vmem:[#allocation5 + $0x50] sm:$0xf] }
  0x19   :  { %912 = vmatpush.bf16.msra.mxu2 %v1463_v8  ;;  %v1391_v17 = vor.u32 %v1881_v15, %v1390_v14  ;;  %v1897_v19 = vld [vmem:[#allocation5 + $0x164] sm:$0xf0]  ;;  %v1518_v20 = vld [vmem:[#allocation5 + $0x1e0] sm:$0xf]  ;;  %v1863_v24 = vld [vmem:[#allocation5 + $0x54] sm:$0xf0] }
  0x1a   :  { %925 = vmatpush.bf16.msra.mxu3 %v1527_v12  ;;  %v1455_v21 = vor.u32 %v1897_v19, %v1454_v18  ;;  %v1913_v22 = vld [vmem:[#allocation5 + $0x1e4] sm:$0xf0]  ;;  %v1382_v26 = vld [vmem:[#allocation5 + $0xd0] sm:$0xf]  ;;  %v1879_v27 = vld [vmem:[#allocation5 + $0xd4] sm:$0xf0]  ;;  %v1319_v29 = vor.u32 %v1863_v24, %v1318_v23 }
  0x1b   :  { %v1519_v25 = vor.u32 %v1913_v22, %v1518_v20  ;;  %v1446_v28 = vld [vmem:[#allocation5 + $0x150] sm:$0xf]  ;;  %887 = vmatpush.bf16.msra.mxu0 %v1327_v16  ;;  %v1895_v30 = vld [vmem:[#allocation5 + $0x154] sm:$0xf0]  ;;  %v1383_v33 = vor.u32 %v1879_v27, %v1382_v26  ;;  %v1310_v35 = vld [vmem:[#allocation5 + $0x40] sm:$0xf] }
  0x1c   :  { %v1510_v31 = vld [vmem:[#allocation5 + $0x1d0] sm:$0xf]  ;;  %v1911_v32 = vld [vmem:[#allocation5 + $0x1d4] sm:$0xf0]  ;;  %900 = vmatpush.bf16.msra.mxu1 %v1391_v17  ;;  %v1447_v34 = vor.u32 %v1895_v30, %v1446_v28  ;;  %v1861_v36 = vld [vmem:[#allocation5 + $0x44] sm:$0xf0] }
  0x1d   :  { %913 = vmatpush.bf16.msra.mxu2 %v1455_v21  ;;  %v1374_v37 = vld [vmem:[#allocation5 + $0xc0] sm:$0xf]  ;;  %v1511_v38 = vor.u32 %v1911_v32, %v1510_v31  ;;  %v1877_v39 = vld [vmem:[#allocation5 + $0xc4] sm:$0xf0]  ;;  %v1311_v44 = vor.u32 %v1861_v36, %v1310_v35  ;;  %v1302_v47 = vld [vmem:[#allocation5 + $0x30] sm:$0xf] }
  0x1e   :  { %926 = vmatpush.bf16.msra.mxu3 %v1519_v25  ;;  %v1438_v40 = vld [vmem:[#allocation5 + $0x140] sm:$0xf]  ;;  %v1893_v41 = vld [vmem:[#allocation5 + $0x144] sm:$0xf0]  ;;  %v1375_v45 = vor.u32 %v1877_v39, %v1374_v37  ;;  %v1859_v48 = vld [vmem:[#allocation5 + $0x34] sm:$0xf0] }
  0x1f   :  { %v1502_v42 = vld [vmem:[#allocation5 + $0x1c0] sm:$0xf]  ;;  %v1909_v43 = vld [vmem:[#allocation5 + $0x1c4] sm:$0xf0]  ;;  %888 = vmatpush.bf16.msra.mxu0 %v1319_v29  ;;  %v1439_v46 = vor.u32 %v1893_v41, %v1438_v40  ;;  %v1366_v49 = vld [vmem:[#allocation5 + $0xb0] sm:$0xf]  ;;  %v1303_v56 = vor.u32 %v1859_v48, %v1302_v47 }
  0x20   :  { %901 = vmatpush.bf16.msra.mxu1 %v1383_v33  ;;  %v1503_v50 = vor.u32 %v1909_v43, %v1502_v42  ;;  %v1875_v51 = vld [vmem:[#allocation5 + $0xb4] sm:$0xf0]  ;;  %v1430_v52 = vld [vmem:[#allocation5 + $0x130] sm:$0xf]  ;;  %v1294_v59 = vld [vmem:[#allocation5 + $0x20] sm:$0xf] }
  0x21   :  { %914 = vmatpush.bf16.msra.mxu2 %v1447_v34  ;;  %v1891_v53 = vld [vmem:[#allocation5 + $0x134] sm:$0xf0]  ;;  %v1494_v54 = vld [vmem:[#allocation5 + $0x1b0] sm:$0xf]  ;;  %v1367_v57 = vor.u32 %v1875_v51, %v1366_v49  ;;  %v1857_v60 = vld [vmem:[#allocation5 + $0x24] sm:$0xf0] }
  0x22   :  { %927 = vmatpush.bf16.msra.mxu3 %v1511_v38  ;;  %v1907_v55 = vld [vmem:[#allocation5 + $0x1b4] sm:$0xf0]  ;;  %v1431_v58 = vor.u32 %v1891_v53, %v1430_v52  ;;  %v1358_v61 = vld [vmem:[#allocation5 + $0xa0] sm:$0xf]  ;;  %v1873_v63 = vld [vmem:[#allocation5 + $0xa4] sm:$0xf0]  ;;  %v1295_v4 = vor.u32 %v1857_v60, %v1294_v59 }
  0x23   :  { %889 = vmatpush.bf16.msra.mxu0 %v1311_v44  ;;  %v1495_v62 = vor.u32 %v1907_v55, %v1494_v54  ;;  %v1422_v0 = vld [vmem:[#allocation5 + $0x120] sm:$0xf]  ;;  %v1889_v1 = vld [vmem:[#allocation5 + $0x124] sm:$0xf0]  ;;  %v1359_v5 = vor.u32 %v1873_v63, %v1358_v61  ;;  %v1286_v7 = vld [vmem:[#allocation5 + $0x10] sm:$0xf] }
  0x24   :  { %902 = vmatpush.bf16.msra.mxu1 %v1375_v45  ;;  %v1486_v2 = vld [vmem:[#allocation5 + $0x1a0] sm:$0xf]  ;;  %v1905_v3 = vld [vmem:[#allocation5 + $0x1a4] sm:$0xf0]  ;;  %v1423_v6 = vor.u32 %v1889_v1, %v1422_v0  ;;  %v1855_v8 = vld [vmem:[#allocation5 + $0x14] sm:$0xf0] }
  0x25   :  { %915 = vmatpush.bf16.msra.mxu2 %v1439_v46  ;;  %v1350_v9 = vld [vmem:[#allocation5 + $0x90] sm:$0xf]  ;;  %v1487_v10 = vor.u32 %v1905_v3, %v1486_v2  ;;  %v1871_v11 = vld [vmem:[#allocation5 + $0x94] sm:$0xf0]  ;;  %v1287_v16 = vor.u32 %v1855_v8, %v1286_v7  ;;  %v1278_v17 = vld [vmem:[#allocation5] sm:$0xf] }
  0x26   :  { %928 = vmatpush.bf16.msra.mxu3 %v1503_v50  ;;  %v1414_v12 = vld [vmem:[#allocation5 + $0x110] sm:$0xf]  ;;  %v1887_v13 = vld [vmem:[#allocation5 + $0x114] sm:$0xf0]  ;;  %v1853_v18 = vld [vmem:[#allocation5 + $0x4] sm:$0xf0]  ;;  %v1351_v19 = vor.u32 %v1871_v11, %v1350_v9 }
  0x27   :  { %890 = vmatpush.bf16.msra.mxu0 %v1303_v56  ;;  %v1478_v14 = vld [vmem:[#allocation5 + $0x190] sm:$0xf]  ;;  %v1903_v15 = vld [vmem:[#allocation5 + $0x194] sm:$0xf0]  ;;  %v1415_v20 = vor.u32 %v1887_v13, %v1414_v12  ;;  %v1342_v21 = vld [vmem:[#allocation5 + $0x80] sm:$0xf]  ;;  %v1279_v31 = vor.u32 %v1853_v18, %v1278_v17 }
  0x28   :  { %903 = vmatpush.bf16.msra.mxu1 %v1367_v57  ;;  %v1869_v22 = vld [vmem:[#allocation5 + $0x84] sm:$0xf0]  ;;  %v1406_v23 = vld [vmem:[#allocation5 + $0x100] sm:$0xf]  ;;  %v1479_v24 = vor.u32 %v1903_v15, %v1478_v14  ;;  %v1590_v28 = vld [vmem:[#allocation5 + $0x270] sm:$0xf] }
  0x29   :  { %916 = vmatpush.bf16.msra.mxu2 %v1431_v58  ;;  %v1885_v25 = vld [vmem:[#allocation5 + $0x104] sm:$0xf0]  ;;  %v1470_v26 = vld [vmem:[#allocation5 + $0x180] sm:$0xf]  ;;  %v1931_v29 = vld [vmem:[#allocation5 + $0x274] sm:$0xf0]  ;;  %v1343_v35 = vor.u32 %v1869_v22, %v1342_v21 }
  0x2a   :  { %929 = vmatpush.bf16.msra.mxu3 %v1495_v62  ;;  %v1901_v27 = vld [vmem:[#allocation5 + $0x184] sm:$0xf0]  ;;  %v1654_v30 = vld [vmem:[#allocation5 + $0x2f0] sm:$0xf]  ;;  %v1947_v32 = vld [vmem:[#allocation5 + $0x2f4] sm:$0xf0]  ;;  %v1407_v36 = vor.u32 %v1885_v25, %v1406_v23  ;;  %v1591_v40 = vor.u32 %v1931_v29, %v1590_v28 }
  0x2b   :  { %891 = vmatpush.bf16.msra.mxu0 %v1295_v4  ;;  %v1718_v33 = vld [vmem:[#allocation5 + $0x370] sm:$0xf]  ;;  %v1963_v34 = vld [vmem:[#allocation5 + $0x374] sm:$0xf0]  ;;  %v1471_v39 = vor.u32 %v1901_v27, %v1470_v26  ;;  %v1655_v41 = vor.u32 %v1947_v32, %v1654_v30  ;;  %v1582_v43 = vld [vmem:[#allocation5 + $0x260] sm:$0xf] }
  0x2c   :  { %904 = vmatpush.bf16.msra.mxu1 %v1359_v5  ;;  %v1782_v37 = vld [vmem:[#allocation5 + $0x3f0] sm:$0xf]  ;;  %v1979_v38 = vld [vmem:[#allocation5 + $0x3f4] sm:$0xf0]  ;;  %v1719_v42 = vor.u32 %v1963_v34, %v1718_v33  ;;  %v1929_v44 = vld [vmem:[#allocation5 + $0x264] sm:$0xf0] }
  0x2d   :  { %917 = vmatpush.bf16.msra.mxu2 %v1423_v6  ;;  %v1646_v45 = vld [vmem:[#allocation5 + $0x2e0] sm:$0xf]  ;;  %v1783_v46 = vor.u32 %v1979_v38, %v1782_v37  ;;  %v1945_v47 = vld [vmem:[#allocation5 + $0x2e4] sm:$0xf0]  ;;  %v1583_v53 = vor.u32 %v1929_v44, %v1582_v43  ;;  %v1574_v54 = vld [vmem:[#allocation5 + $0x250] sm:$0xf] }
  0x2e   :  { %930 = vmatpush.bf16.msra.mxu3 %v1487_v10  ;;  %v1710_v48 = vld [vmem:[#allocation5 + $0x360] sm:$0xf]  ;;  %v1961_v49 = vld [vmem:[#allocation5 + $0x364] sm:$0xf0]  ;;  %v1647_v57 = vor.u32 %v1945_v47, %v1646_v45  ;;  %v1927_v59 = vld [vmem:[#allocation5 + $0x254] sm:$0xf0] }
  0x2f   :  { %892 = vmatpush.bf16.msra.mxu0 %v1287_v16  ;;  %v1774_v50 = vld [vmem:[#allocation5 + $0x3e0] sm:$0xf]  ;;  %v1977_v51 = vld [vmem:[#allocation5 + $0x3e4] sm:$0xf0]  ;;  %v1711_v58 = vor.u32 %v1961_v49, %v1710_v48  ;;  %v1638_v60 = vld [vmem:[#allocation5 + $0x2d0] sm:$0xf]  ;;  %v1575_v8 = vor.u32 %v1927_v59, %v1574_v54 }
  0x30   :  { %905 = vmatpush.bf16.msra.mxu1 %v1351_v19  ;;  %v81_v52 = vld [vmem:[#allocation2 + $0x8] sm:$0xff]  ;;  %v1943_v61 = vld [vmem:[#allocation5 + $0x2d4] sm:$0xf0]  ;;  %v1775_v62 = vor.u32 %v1977_v51, %v1774_v50  ;;  %v1702_v63 = vld [vmem:[#allocation5 + $0x350] sm:$0xf]  ;;  %s2142_s15 = smov [#allocation10]  }
  0x31   :  { %918 = vmatpush.bf16.msra.mxu2 %v1415_v20  ;;  %v224_v55 = vunpack.c.l.b16 %v81_v52  ;;  %v225_v56 = vunpack.c.h.b16 %v81_v52  ;;  %v1959_v0 = vld [vmem:[#allocation5 + $0x354] sm:$0xf0]  ;;  %v80_v2 = vld [vmem:[#allocation2] sm:$0xff]  ;;  %v1766_v3 = vld [vmem:[#allocation5 + $0x3d0] sm:$0xf]  ;;  %v1639_v9 = vor.u32 %v1943_v61, %v1638_v60  ;;  %s1262_s16 = sshll.u32 %s2142_s15, 4  ;;  %s1263_s16 = int_to_ptr.vmem [resolvable:$true] %s1262_s16 }
  0x32   :  { %931 = vmatpush.bf16.msra.mxu3 %v1479_v24  ;;  %v1975_v4 = vld [vmem:[#allocation5 + $0x3d4] sm:$0xf0]  ;;  %v222_v5 = vunpack.c.l.b16 %v80_v2  ;;  %v223_v7 = vunpack.c.h.b16 %v80_v2  ;;  %v1703_v10 = vor.u32 %v1959_v0, %v1702_v63  ;;  %v1566_v11 = vld [vmem:[#allocation5 + $0x240] sm:$0xf]  ;;  %v1925_v12 = vld [vmem:[#allocation5 + $0x244] sm:$0xf0] }
  0x33   :  { %893 = vmatpush.bf16.msra.mxu0 %v1279_v31  ;;  %v2185_v1 = vpack.c.b16 %v224_v55, %v224_v55  ;;  %v2187_v6 = vpack.c.b16 %v225_v56, %v225_v56  ;;  %v1630_v13 = vld [vmem:[#allocation5 + $0x2c0] sm:$0xf]  ;;  %v1767_v16 = vor.u32 %v1975_v4, %v1766_v3  ;;  %v1941_v17 = vld [vmem:[#allocation5 + $0x2c4] sm:$0xf0]  ;;  %v1567_v22 = vor.u32 %v1925_v12, %v1566_v11  ;;  %v1558_v25 = vld [vmem:[#allocation5 + $0x230] sm:$0xf] }
  0x34   :  { %906 = vmatpush.bf16.msra.mxu1 %v1343_v35  ;;  %v2190_v14 = vpack.c.b16 %v222_v5, %v222_v5  ;;  %v2192_v15 = vpack.c.b16 %v223_v7, %v223_v7  ;;  %v1694_v18 = vld [vmem:[#allocation5 + $0x340] sm:$0xf]  ;;  %v1957_v19 = vld [vmem:[#allocation5 + $0x344] sm:$0xf0]  ;;  %v1631_v23 = vor.u32 %v1941_v17, %v1630_v13  ;;  %v1923_v26 = vld [vmem:[#allocation5 + $0x234] sm:$0xf0] }
  0x35   :  { %919 = vmatpush.bf16.msra.mxu2 %v1407_v36  ;;  %v1758_v20 = vld [vmem:[#allocation5 + $0x3c0] sm:$0xf]  ;;  %v1973_v21 = vld [vmem:[#allocation5 + $0x3c4] sm:$0xf0]  ;;  %v1695_v24 = vor.u32 %v1957_v19, %v1694_v18  ;;  %v1622_v27 = vld [vmem:[#allocation5 + $0x2b0] sm:$0xf]  ;;  %v1559_v34 = vor.u32 %v1923_v26, %v1558_v25 }
  0x36   :  { %932 = vmatpush.bf16.msra.mxu3 %v1471_v39  ;;  %894 = vmatmul.bf16.vlgmr.msra.gmra.mxu0 %v2190_v14  ;;  %v1759_v28 = vor.u32 %v1973_v21, %v1758_v20  ;;  %v1939_v29 = vld [vmem:[#allocation5 + $0x2b4] sm:$0xf0]  ;;  %v1686_v30 = vld [vmem:[#allocation5 + $0x330] sm:$0xf]  ;;  %v1550_v37 = vld [vmem:[#allocation5 + $0x220] sm:$0xf] }
  0x37   :  { %938 = vmatpush.bf16.msrb.mxu0 %v1591_v40  ;;  %907 = vmatmul.bf16.vlgmr.msra.gmra.mxu1 %v2192_v15  ;;  %v1955_v31 = vld [vmem:[#allocation5 + $0x334] sm:$0xf0]  ;;  %v1750_v32 = vld [vmem:[#allocation5 + $0x3b0] sm:$0xf]  ;;  %v1623_v35 = vor.u32 %v1939_v29, %v1622_v27  ;;  %v1921_v38 = vld [vmem:[#allocation5 + $0x224] sm:$0xf0] }
  0x38   :  { %951 = vmatpush.bf16.msrb.mxu1 %v1655_v41  ;;  %920 = vmatmul.bf16.vlgmr.msra.gmra.mxu2 %v2185_v1  ;;  %v1971_v33 = vld [vmem:[#allocation5 + $0x3b4] sm:$0xf0]  ;;  %v1687_v36 = vor.u32 %v1955_v31, %v1686_v30  ;;  %v1614_v39 = vld [vmem:[#allocation5 + $0x2a0] sm:$0xf]  ;;  %v1937_v41 = vld [vmem:[#allocation5 + $0x2a4] sm:$0xf0] }
  0x39   :  { %964 = vmatpush.bf16.msrb.mxu2 %v1719_v42  ;;  %933 = vmatmul.bf16.vlgmr.msra.gmra.mxu3 %v2187_v6  ;;  %v1751_v40 = vor.u32 %v1971_v33, %v1750_v32  ;;  %v1678_v42 = vld [vmem:[#allocation5 + $0x320] sm:$0xf]  ;;  %v1953_v43 = vld [vmem:[#allocation5 + $0x324] sm:$0xf0]  ;;  %v1615_v47 = vor.u32 %v1937_v41, %v1614_v39  ;;  %v1542_v49 = vld [vmem:[#allocation5 + $0x210] sm:$0xf] }
  0x3a   :  { %977 = vmatpush.bf16.msrb.mxu3 %v1783_v46  ;;  %v1742_v44 = vld [vmem:[#allocation5 + $0x3a0] sm:$0xf]  ;;  %v1969_v45 = vld [vmem:[#allocation5 + $0x3a4] sm:$0xf0]  ;;  %v1551_v46 = vor.u32 %v1921_v38, %v1550_v37  ;;  %v1679_v48 = vor.u32 %v1953_v43, %v1678_v42  ;;  %v1919_v50 = vld [vmem:[#allocation5 + $0x214] sm:$0xf0] }
  0x3b   :  { %939 = vmatpush.bf16.msrb.mxu0 %v1583_v53  ;;  %v1606_v51 = vld [vmem:[#allocation5 + $0x290] sm:$0xf]  ;;  %v1743_v52 = vor.u32 %v1969_v45, %v1742_v44  ;;  %v1935_v53 = vld [vmem:[#allocation5 + $0x294] sm:$0xf0]  ;;  %v1543_v59 = vor.u32 %v1919_v50, %v1542_v49  ;;  %v1917_v60 = vld [vmem:[#allocation5 + $0x204] sm:$0xf0] }
  0x3c   :  { %952 = vmatpush.bf16.msrb.mxu1 %v1647_v57  ;;  %v1670_v54 = vld [vmem:[#allocation5 + $0x310] sm:$0xf]  ;;  %v1951_v55 = vld [vmem:[#allocation5 + $0x314] sm:$0xf0]  ;;  %v1598_v61 = vld [vmem:[#allocation5 + $0x280] sm:$0xf]  ;;  %v1607_v63 = vor.u32 %v1935_v53, %v1606_v51 }
  0x3d   :  { %965 = vmatpush.bf16.msrb.mxu2 %v1711_v58  ;;  %v1734_v56 = vld [vmem:[#allocation5 + $0x390] sm:$0xf]  ;;  %v1967_v57 = vld [vmem:[#allocation5 + $0x394] sm:$0xf0]  ;;  %v1534_v58 = vld [vmem:[#allocation5 + $0x200] sm:$0xf]  ;;  %v1671_v0 = vor.u32 %v1951_v55, %v1670_v54 }
  0x3e   :  { %978 = vmatpush.bf16.msrb.mxu3 %v1775_v62  ;;  %v1933_v62 = vld [vmem:[#allocation5 + $0x284] sm:$0xf0]  ;;  %v1662_v2 = vld [vmem:[#allocation5 + $0x300] sm:$0xf]  ;;  %v83_v4 = vld [vmem:[#allocation2 + $0x18] sm:$0xff]  ;;  %v1735_v5 = vor.u32 %v1967_v57, %v1734_v56  ;;  %v1535_v13 = vor.u32 %v1917_v60, %v1534_v58  ;;  %s1264_s19 = sshll.u32 %s2228_s5, 4  ;;  %s1265_s19 = int_to_ptr.hbm [resolvable:$true] %s1264_s19 }
  0x3f   :  { %940 = vmatpush.bf16.msrb.mxu0 %v1575_v8  ;;  %v1949_v3 = vld [vmem:[#allocation5 + $0x304] sm:$0xf0]  ;;  %v1726_v7 = vld [vmem:[#allocation5 + $0x380] sm:$0xf]  ;;  %v1336_v11 = vld [vmem:[#allocation5 + $0x78] sm:$0xf0]  ;;  %v228_v19 = vunpack.c.l.b16 %v83_v4  ;;  %v1599_v20 = vor.u32 %v1933_v62, %v1598_v61  ;;  %v229_v25 = vunpack.c.h.b16 %v83_v4 }
  0x40   :  { %953 = vmatpush.bf16.msrb.mxu1 %v1639_v9  ;;  %v1965_v8 = vld [vmem:[#allocation5 + $0x384] sm:$0xf0]  ;;  %v82_v9 = vld [vmem:[#allocation2 + $0x10] sm:$0xff]  ;;  %v1464_v18 = vld [vmem:[#allocation5 + $0x178] sm:$0xf0]  ;;  %v1663_v21 = vor.u32 %v1949_v3, %v1662_v2 }
  0x41   :  { %966 = vmatpush.bf16.msrb.mxu2 %v1703_v10  ;;  %v1866_v10 = vld [vmem:[#allocation5 + $0x74] sm:$0xf]  ;;  %v1727_v26 = vor.u32 %v1965_v8, %v1726_v7  ;;  %v1864_v31 = vld [vmem:[#allocation5 + $0x64] sm:$0xf]  ;;  %v1328_v32 = vld [vmem:[#allocation5 + $0x68] sm:$0xf0] }
  0x42   :  { %979 = vmatpush.bf16.msrb.mxu3 %v1767_v16  ;;  %v1882_v12 = vld [vmem:[#allocation5 + $0xf4] sm:$0xf]  ;;  %v1400_v16 = vld [vmem:[#allocation5 + $0xf8] sm:$0xf0]  ;;  %v1339_v27 = vor.u32 %v1866_v10, %v1336_v11  ;;  %v1880_v33 = vld [vmem:[#allocation5 + $0xe4] sm:$0xf]  ;;  %v1331_v43 = vor.u32 %v1864_v31, %v1328_v32 }
  0x43   :  { %941 = vmatpush.bf16.msrb.mxu0 %v1567_v22  ;;  %v1898_v17 = vld [vmem:[#allocation5 + $0x174] sm:$0xf]  ;;  %v1403_v29 = vor.u32 %v1882_v12, %v1400_v16  ;;  %v1896_v37 = vld [vmem:[#allocation5 + $0x164] sm:$0xf]  ;;  %v1456_v38 = vld [vmem:[#allocation5 + $0x168] sm:$0xf0] }
  0x44   :  { %954 = vmatpush.bf16.msrb.mxu1 %v1631_v23  ;;  %v1914_v22 = vld [vmem:[#allocation5 + $0x1f4] sm:$0xf]  ;;  %v1528_v23 = vld [vmem:[#allocation5 + $0x1f8] sm:$0xf0]  ;;  %v1467_v30 = vor.u32 %v1898_v17, %v1464_v18  ;;  %v1912_v41 = vld [vmem:[#allocation5 + $0x1e4] sm:$0xf] }
  0x45   :  { %967 = vmatpush.bf16.msrb.mxu2 %v1695_v24  ;;  %v226_v24 = vunpack.c.l.b16 %v82_v9  ;;  %v1520_v42 = vld [vmem:[#allocation5 + $0x1e8] sm:$0xf0]  ;;  %v1878_v49 = vld [vmem:[#allocation5 + $0xd4] sm:$0xf]  ;;  %v1384_v51 = vld [vmem:[#allocation5 + $0xd8] sm:$0xf0] }
  0x46   :  { %980 = vmatpush.bf16.msrb.mxu3 %v1759_v28  ;;  %v227_v28 = vunpack.c.h.b16 %v82_v9  ;;  %v1523_v50 = vor.u32 %v1912_v41, %v1520_v42  ;;  %v1448_v53 = vld [vmem:[#allocation5 + $0x158] sm:$0xf0]  ;;  %v1910_v54 = vld [vmem:[#allocation5 + $0x1d4] sm:$0xf]  ;;  %v1387_v57 = vor.u32 %v1878_v49, %v1384_v51  ;;  %v1312_v60 = vld [vmem:[#allocation5 + $0x48] sm:$0xf0] }
  0x47   :  { %942 = vmatpush.bf16.msrb.mxu0 %v1559_v34  ;;  %v1531_v34 = vor.u32 %v1914_v22, %v1528_v23  ;;  %v2199_v39 = vpack.c.b16 %v226_v24, %v226_v24  ;;  %v1512_v55 = vld [vmem:[#allocation5 + $0x1d8] sm:$0xf0]  ;;  %v1876_v61 = vld [vmem:[#allocation5 + $0xc4] sm:$0xf]  ;;  %v1440_v2 = vld [vmem:[#allocation5 + $0x148] sm:$0xf0] }
  0x48   :  { %955 = vmatpush.bf16.msrb.mxu1 %v1623_v35  ;;  %v2197_v35 = vpack.c.b16 %v228_v19, %v228_v19  ;;  %v2203_v44 = vpack.c.b16 %v227_v28, %v227_v28  ;;  %v1515_v62 = vor.u32 %v1910_v54, %v1512_v55  ;;  %v1908_v3 = vld [vmem:[#allocation5 + $0x1c4] sm:$0xf]  ;;  %v1504_v4 = vld [vmem:[#allocation5 + $0x1c8] sm:$0xf0]  ;;  %v1858_v9 = vld [vmem:[#allocation5 + $0x34] sm:$0xf] }
  0x49   :  { %968 = vmatpush.bf16.msrb.mxu2 %v1687_v36  ;;  %v1392_v36 = vld [vmem:[#allocation5 + $0xe8] sm:$0xf0]  ;;  %v1304_v10 = vld [vmem:[#allocation5 + $0x38] sm:$0xf0]  ;;  %v1874_v11 = vld [vmem:[#allocation5 + $0xb4] sm:$0xf]  ;;  %v1507_v12 = vor.u32 %v1908_v3, %v1504_v4 }
  0x4a   :  { %981 = vmatpush.bf16.msrb.mxu3 %v1751_v40  ;;  %v2201_v40 = vpack.c.b16 %v229_v25, %v229_v25  ;;  %v1395_v45 = vor.u32 %v1880_v33, %v1392_v36  ;;  %v1890_v16 = vld [vmem:[#allocation5 + $0x134] sm:$0xf]  ;;  %v1432_v17 = vld [vmem:[#allocation5 + $0x138] sm:$0xf0]  ;;  %v1856_v23 = vld [vmem:[#allocation5 + $0x24] sm:$0xf] }
  0x4b   :  { %943 = vmatpush.bf16.msrb.mxu0 %v1551_v46  ;;  %v1459_v46 = vor.u32 %v1896_v37, %v1456_v38  ;;  %v1906_v18 = vld [vmem:[#allocation5 + $0x1b4] sm:$0xf]  ;;  %v1496_v19 = vld [vmem:[#allocation5 + $0x1b8] sm:$0xf0]  ;;  %v1435_v22 = vor.u32 %v1890_v16, %v1432_v17  ;;  %v1296_v24 = vld [vmem:[#allocation5 + $0x28] sm:$0xf0] }
  0x4c   :  { %956 = vmatpush.bf16.msrb.mxu1 %v1615_v47  ;;  %v1862_v47 = vld [vmem:[#allocation5 + $0x54] sm:$0xf]  ;;  %v1872_v25 = vld [vmem:[#allocation5 + $0xa4] sm:$0xf]  ;;  %v1488_v31 = vld [vmem:[#allocation5 + $0x1a8] sm:$0xf0]  ;;  %v1299_v32 = vor.u32 %v1856_v23, %v1296_v24 }
  0x4d   :  { %969 = vmatpush.bf16.msrb.mxu2 %v1679_v48  ;;  %v1320_v48 = vld [vmem:[#allocation5 + $0x58] sm:$0xf0]  ;;  %v1888_v28 = vld [vmem:[#allocation5 + $0x124] sm:$0xf]  ;;  %v1854_v36 = vld [vmem:[#allocation5 + $0x14] sm:$0xf] }
  0x4e   :  { %982 = vmatpush.bf16.msrb.mxu3 %v1743_v52  ;;  %v1894_v52 = vld [vmem:[#allocation5 + $0x154] sm:$0xf]  ;;  %v1323_v56 = vor.u32 %v1862_v47, %v1320_v48  ;;  %v1288_v37 = vld [vmem:[#allocation5 + $0x18] sm:$0xf0]  ;;  %v1852_v49 = vld [vmem:[#allocation5 + $0x4] sm:$0xf] }
  0x4f   :  { %944 = vmatpush.bf16.msrb.mxu0 %v1543_v59  ;;  %v1451_v58 = vor.u32 %v1894_v52, %v1448_v53  ;;  %v1860_v59 = vld [vmem:[#allocation5 + $0x44] sm:$0xf]  ;;  %v1870_v38 = vld [vmem:[#allocation5 + $0x94] sm:$0xf]  ;;  %v1352_v42 = vld [vmem:[#allocation5 + $0x98] sm:$0xf0]  ;;  %v1291_v48 = vor.u32 %v1854_v36, %v1288_v37 }
  0x50   :  { %957 = vmatpush.bf16.msrb.mxu1 %v1607_v63  ;;  %v1376_v63 = vld [vmem:[#allocation5 + $0xc8] sm:$0xf0]  ;;  %v1480_v47 = vld [vmem:[#allocation5 + $0x198] sm:$0xf0]  ;;  %v1355_v51 = vor.u32 %v1870_v38, %v1352_v42  ;;  %v1868_v53 = vld [vmem:[#allocation5 + $0x84] sm:$0xf] }
  0x51   :  { %970 = vmatpush.bf16.msrb.mxu2 %v1671_v0  ;;  %v1892_v0 = vld [vmem:[#allocation5 + $0x144] sm:$0xf]  ;;  %v1379_v7 = vor.u32 %v1876_v61, %v1376_v63  ;;  %v1344_v54 = vld [vmem:[#allocation5 + $0x88] sm:$0xf0]  ;;  %v1592_v61 = vld [vmem:[#allocation5 + $0x278] sm:$0xf0] }
  0x52   :  { %983 = vmatpush.bf16.msrb.mxu3 %v1735_v5  ;;  %v1315_v5 = vor.u32 %v1860_v59, %v1312_v60  ;;  %v1443_v8 = vor.u32 %v1892_v0, %v1440_v2  ;;  %v1884_v55 = vld [vmem:[#allocation5 + $0x104] sm:$0xf]  ;;  %v1472_v59 = vld [vmem:[#allocation5 + $0x188] sm:$0xf0]  ;;  %v1930_v60 = vld [vmem:[#allocation5 + $0x274] sm:$0xf]  ;;  %v1347_v4 = vor.u32 %v1868_v53, %v1344_v54 }
  0x53   :  { %945 = vmatpush.bf16.msrb.mxu0 %v1535_v13  ;;  %v1368_v13 = vld [vmem:[#allocation5 + $0xb8] sm:$0xf0]  ;;  %v1962_v2 = vld [vmem:[#allocation5 + $0x374] sm:$0xf]  ;;  %v1584_v16 = vld [vmem:[#allocation5 + $0x268] sm:$0xf0] }
  0x54   :  { %958 = vmatpush.bf16.msrb.mxu1 %v1599_v20  ;;  %v1307_v20 = vor.u32 %v1858_v9, %v1304_v10  ;;  %v1656_v0 = vld [vmem:[#allocation5 + $0x2f8] sm:$0xf0]  ;;  %v1595_v10 = vor.u32 %v1930_v60, %v1592_v61  ;;  %v1944_v17 = vld [vmem:[#allocation5 + $0x2e4] sm:$0xf]  ;;  %v1776_v23 = vld [vmem:[#allocation5 + $0x3e8] sm:$0xf0] }
  0x55   :  { %971 = vmatpush.bf16.msrb.mxu2 %v1663_v21  ;;  %v1371_v21 = vor.u32 %v1874_v11, %v1368_v13  ;;  %v1720_v3 = vld [vmem:[#allocation5 + $0x378] sm:$0xf0]  ;;  %v1928_v13 = vld [vmem:[#allocation5 + $0x264] sm:$0xf]  ;;  %v1938_v53 = vld [vmem:[#allocation5 + $0x2b4] sm:$0xf] }
  0x56   :  { %984 = vmatpush.bf16.msrb.mxu3 %v1727_v26  ;;  %946 = vmatmul.bf16.vlgmr.msrb.gmra.mxu0 %v2199_v39  ;;  %v1499_v26 = vor.u32 %v1906_v18, %v1496_v19  ;;  %v1648_v19 = vld [vmem:[#allocation5 + $0x2e8] sm:$0xf0]  ;;  %v1587_v24 = vor.u32 %v1928_v13, %v1584_v16  ;;  %v1768_v36 = vld [vmem:[#allocation5 + $0x3d8] sm:$0xf0]  ;;  %v1924_v42 = vld [vmem:[#allocation5 + $0x244] sm:$0xf] }
  0x57   :  { %990 = vmatpush.bf16.msra.mxu0 %v1339_v27  ;;  %959 = vmatmul.bf16.vlgmr.msrb.gmra.mxu1 %v2203_v44  ;;  %v1360_v27 = vld [vmem:[#allocation5 + $0xa8] sm:$0xf0]  ;;  %v1918_v13 = vld [vmem:[#allocation5 + $0x214] sm:$0xf]  ;;  %v1544_v16 = vld [vmem:[#allocation5 + $0x218] sm:$0xf0] }
  0x58   :  { %1003 = vmatpush.bf16.msra.mxu1 %v1403_v29  ;;  %972 = vmatmul.bf16.vlgmr.msrb.gmra.mxu2 %v2197_v35  ;;  %v1424_v29 = vld [vmem:[#allocation5 + $0x128] sm:$0xf0]  ;;  %v1363_v33 = vor.u32 %v1872_v25, %v1360_v27  ;;  %v1651_v25 = vor.u32 %v1944_v17, %v1648_v19  ;;  %v1926_v27 = vld [vmem:[#allocation5 + $0x254] sm:$0xf]  ;;  %v1608_v19 = vld [vmem:[#allocation5 + $0x298] sm:$0xf0] }
  0x59   :  { %1016 = vmatpush.bf16.msra.mxu2 %v1467_v30  ;;  %985 = vmatmul.bf16.vlgmr.msrb.gmra.mxu3 %v2201_v40  ;;  %v1904_v30 = vld [vmem:[#allocation5 + $0x1a4] sm:$0xf]  ;;  %v1934_v17 = vld [vmem:[#allocation5 + $0x294] sm:$0xf] }
  0x5a   :  { %1029 = vmatpush.bf16.msra.mxu3 %v1531_v34  ;;  %v1427_v34 = vor.u32 %v1888_v28, %v1424_v29  ;;  %v1491_v41 = vor.u32 %v1904_v30, %v1488_v31  ;;  %v1576_v28 = vld [vmem:[#allocation5 + $0x258] sm:$0xf0]  ;;  %v1942_v29 = vld [vmem:[#allocation5 + $0x2d4] sm:$0xf] }
  0x5b   :  { %991 = vmatpush.bf16.msra.mxu0 %v1331_v43  ;;  %v1886_v43 = vld [vmem:[#allocation5 + $0x114] sm:$0xf]  ;;  %v1640_v31 = vld [vmem:[#allocation5 + $0x2d8] sm:$0xf0]  ;;  %v1579_v37 = vor.u32 %v1926_v27, %v1576_v28  ;;  %v1916_v27 = vld [vmem:[#allocation5 + $0x204] sm:$0xf] }
  0x5c   :  { %1004 = vmatpush.bf16.msra.mxu1 %v1395_v45  ;;  %v1416_v45 = vld [vmem:[#allocation5 + $0x118] sm:$0xf0]  ;;  %v1643_v38 = vor.u32 %v1942_v29, %v1640_v31  ;;  %v1536_v28 = vld [vmem:[#allocation5 + $0x208] sm:$0xf0]  ;;  %v1932_v29 = vld [vmem:[#allocation5 + $0x284] sm:$0xf] }
  0x5d   :  { %1017 = vmatpush.bf16.msra.mxu2 %v1459_v46  ;;  %v1902_v46 = vld [vmem:[#allocation5 + $0x194] sm:$0xf]  ;;  %v1419_v52 = vor.u32 %v1886_v43, %v1416_v45  ;;  %v1568_v43 = vld [vmem:[#allocation5 + $0x248] sm:$0xf0] }
  0x5e   :  { %1030 = vmatpush.bf16.msra.mxu3 %v1523_v50  ;;  %v1280_v50 = vld [vmem:[#allocation5 + $0x8] sm:$0xf0] }
  0x5f   :  { %992 = vmatpush.bf16.msra.mxu0 %v1323_v56  ;;  %v1483_v56 = vor.u32 %v1902_v46, %v1480_v47  ;;  %v1283_v63 = vor.u32 %v1852_v49, %v1280_v50  ;;  %v1632_v46 = vld [vmem:[#allocation5 + $0x2c8] sm:$0xf0]  ;;  %v1956_v47 = vld [vmem:[#allocation5 + $0x344] sm:$0xf] }
  0x60   :  { %1005 = vmatpush.bf16.msra.mxu1 %v1387_v57  ;;  %v1408_v57 = vld [vmem:[#allocation5 + $0x108] sm:$0xf0]  ;;  %v1972_v49 = vld [vmem:[#allocation5 + $0x3c4] sm:$0xf] }
  0x61   :  { %1018 = vmatpush.bf16.msra.mxu2 %v1451_v58  ;;  %v1900_v58 = vld [vmem:[#allocation5 + $0x184] sm:$0xf]  ;;  %v1600_v31 = vld [vmem:[#allocation5 + $0x288] sm:$0xf0] }
  0x62   :  { %1031 = vmatpush.bf16.msra.mxu3 %v1515_v62  ;;  %v1946_v62 = vld [vmem:[#allocation5 + $0x2f4] sm:$0xf]  ;;  %v1475_v9 = vor.u32 %v1900_v58, %v1472_v59  ;;  %v1752_v59 = vld [vmem:[#allocation5 + $0x3b8] sm:$0xf0] }
  0x63   :  { %993 = vmatpush.bf16.msra.mxu0 %v1315_v5  ;;  %v1411_v5 = vor.u32 %v1884_v55, %v1408_v57  ;;  %v1659_v11 = vor.u32 %v1946_v62, %v1656_v0  ;;  %v1624_v55 = vld [vmem:[#allocation5 + $0x2b8] sm:$0xf0]  ;;  %v1970_v58 = vld [vmem:[#allocation5 + $0x3b4] sm:$0xf]  ;;  %v1552_v0 = vld [vmem:[#allocation5 + $0x228] sm:$0xf0] }
  0x64   :  { %1006 = vmatpush.bf16.msra.mxu1 %v1379_v7  ;;  %v1978_v7 = vld [vmem:[#allocation5 + $0x3f4] sm:$0xf]  ;;  %v1688_v57 = vld [vmem:[#allocation5 + $0x338] sm:$0xf0]  ;;  %v1627_v61 = vor.u32 %v1938_v53, %v1624_v55 }
  0x65   :  { %1019 = vmatpush.bf16.msra.mxu2 %v1443_v8  ;;  %v1784_v8 = vld [vmem:[#allocation5 + $0x3f8] sm:$0xf0] }
  0x66   :  { %1032 = vmatpush.bf16.msra.mxu3 %v1507_v12  ;;  %v1723_v12 = vor.u32 %v1962_v2, %v1720_v3  ;;  %v1787_v18 = vor.u32 %v1978_v7, %v1784_v8  ;;  %v1936_v2 = vld [vmem:[#allocation5 + $0x2a4] sm:$0xf]  ;;  %v1755_v3 = vor.u32 %v1970_v58, %v1752_v59  ;;  %v1680_v7 = vld [vmem:[#allocation5 + $0x328] sm:$0xf0] }
  0x67   :  { %994 = vmatpush.bf16.msra.mxu0 %v1307_v20  ;;  %v1960_v20 = vld [vmem:[#allocation5 + $0x364] sm:$0xf] }
  0x68   :  { %1007 = vmatpush.bf16.msra.mxu1 %v1371_v21  ;;  %v1712_v21 = vld [vmem:[#allocation5 + $0x368] sm:$0xf0]  ;;  %v1968_v8 = vld [vmem:[#allocation5 + $0x3a4] sm:$0xf] }
  0x69   :  { %1020 = vmatpush.bf16.msra.mxu2 %v1435_v22  ;;  %v1976_v22 = vld [vmem:[#allocation5 + $0x3e4] sm:$0xf] }
  0x6a   :  { %1033 = vmatpush.bf16.msra.mxu3 %v1499_v26  ;;  %v1715_v26 = vor.u32 %v1960_v20, %v1712_v21  ;;  %v1779_v30 = vor.u32 %v1976_v22, %v1776_v23  ;;  %v1950_v20 = vld [vmem:[#allocation5 + $0x314] sm:$0xf]  ;;  %v1672_v21 = vld [vmem:[#allocation5 + $0x318] sm:$0xf0] }
  0x6b   :  { %995 = vmatpush.bf16.msra.mxu0 %v1299_v32  ;;  %v1958_v32 = vld [vmem:[#allocation5 + $0x354] sm:$0xf]  ;;  %v1736_v23 = vld [vmem:[#allocation5 + $0x398] sm:$0xf0] }
  0x6c   :  { %1008 = vmatpush.bf16.msra.mxu1 %v1363_v33  ;;  %v1704_v33 = vld [vmem:[#allocation5 + $0x358] sm:$0xf0]  ;;  %v1966_v22 = vld [vmem:[#allocation5 + $0x394] sm:$0xf] }
  0x6d   :  { %1021 = vmatpush.bf16.msra.mxu2 %v1427_v34  ;;  %v1974_v34 = vld [vmem:[#allocation5 + $0x3d4] sm:$0xf] }
  0x6e   :  { %1034 = vmatpush.bf16.msra.mxu3 %v1491_v41  ;;  %v1707_v41 = vor.u32 %v1958_v32, %v1704_v33  ;;  %v1771_v45 = vor.u32 %v1974_v34, %v1768_v36  ;;  %v1948_v32 = vld [vmem:[#allocation5 + $0x304] sm:$0xf]  ;;  %v1664_v33 = vld [vmem:[#allocation5 + $0x308] sm:$0xf0] }
  0x6f   :  { %996 = vmatpush.bf16.msra.mxu0 %v1291_v48  ;;  %v1696_v48 = vld [vmem:[#allocation5 + $0x348] sm:$0xf0]  ;;  %v1964_v34 = vld [vmem:[#allocation5 + $0x384] sm:$0xf] }
  0x70   :  { %1009 = vmatpush.bf16.msra.mxu1 %v1355_v51  ;;  %v1922_v51 = vld [vmem:[#allocation5 + $0x234] sm:$0xf]  ;;  %v1728_v36 = vld [vmem:[#allocation5 + $0x388] sm:$0xf0] }
  0x71   :  { %1022 = vmatpush.bf16.msra.mxu2 %v1419_v52  ;;  %v1560_v52 = vld [vmem:[#allocation5 + $0x238] sm:$0xf0] }
  0x72   :  { %1035 = vmatpush.bf16.msra.mxu3 %v1483_v56  ;;  %v1954_v56 = vld [vmem:[#allocation5 + $0x334] sm:$0xf]  ;;  %v1563_v60 = vor.u32 %v1922_v51, %v1560_v52 }
  0x73   :  { %997 = vmatpush.bf16.msra.mxu0 %v1283_v63  ;;  %v1691_v62 = vor.u32 %v1954_v56, %v1688_v57  ;;  %v1920_v63 = vld [vmem:[#allocation5 + $0x224] sm:$0xf] }
  0x74   :  { %1010 = vmatpush.bf16.msra.mxu1 %v1347_v4  ;;  %v1616_v4 = vld [vmem:[#allocation5 + $0x2a8] sm:$0xf0] }
  0x75   :  { %1023 = vmatpush.bf16.msra.mxu2 %v1411_v5  ;;  %v1952_v5 = vld [vmem:[#allocation5 + $0x324] sm:$0xf] }
  0x76   :  { %1036 = vmatpush.bf16.msra.mxu3 %v1475_v9  ;;  %998 = vmatmul.bf16.vlgmr.msra.gmra.mxu0 %v2190_v14  ;;  %v1760_v14 = vld [vmem:[#allocation5 + $0x3c8] sm:$0xf0] }
  0x77   :  { %1042 = vmatpush.bf16.msrb.mxu0 %v1595_v10  ;;  %1011 = vmatmul.bf16.vlgmr.msra.gmra.mxu1 %v2192_v15  ;;  %v1699_v15 = vor.u32 %v1956_v47, %v1696_v48  ;;  %v1763_v54 = vor.u32 %v1972_v49, %v1760_v14  ;;  %v1744_v9 = vld [vmem:[#allocation5 + $0x3a8] sm:$0xf0]  ;;  %v1555_v10 = vor.u32 %v1920_v63, %v1552_v0  ;;  %v1983_v47 = vld [vmem:[#allocation8 + $0x18] sm:$0xff]  ;;  %v1982_v48 = vld [vmem:[#allocation8 + $0x10] sm:$0xff] }
  0x78   :  { %1055 = vmatpush.bf16.msrb.mxu1 %v1659_v11  ;;  %1024 = vmatmul.bf16.vlgmr.msra.gmra.mxu2 %v2185_v1  ;;  %v1940_v1 = vld [vmem:[#allocation5 + $0x2c4] sm:$0xf]  ;;  %v1619_v11 = vor.u32 %v1936_v2, %v1616_v4  ;;  %v1995_v2 = vld [vmem:[#allocation8 + $0x78] sm:$0xff] }
  0x79   :  { %1068 = vmatpush.bf16.msrb.mxu2 %v1723_v12  ;;  %1037 = vmatmul.bf16.vlgmr.msra.gmra.mxu3 %v2187_v6  ;;  %v1571_v6 = vor.u32 %v1924_v42, %v1568_v43  ;;  %v1635_v50 = vor.u32 %v1940_v1, %v1632_v46  ;;  %v1683_v12 = vor.u32 %v1952_v5, %v1680_v7  ;;  %v1987_v43 = vld [vmem:[#allocation8 + $0x38] sm:$0xff]  ;;  %v1986_v1 = vld [vmem:[#allocation8 + $0x30] sm:$0xff]  ;;  %v1984_v46 = vld [vmem:[#allocation8 + $0x20] sm:$0xff] }
  0x7a   :  { %1081 = vmatpush.bf16.msrb.mxu3 %v1787_v18  ;;  %v1747_v18 = vor.u32 %v1968_v8, %v1744_v9  ;;  %v1731_v42 = vor.u32 %v1964_v34, %v1728_v36  ;;  %v1994_v5 = vld [vmem:[#allocation8 + $0x70] sm:$0xff] }
  0x7b   :  { %1043 = vmatpush.bf16.msrb.mxu0 %v1587_v24  ;;  %v1547_v24 = vor.u32 %v1918_v13, %v1544_v16  ;;  %v1992_v13 = vld [vmem:[#allocation8 + $0x60] sm:$0xff]  ;;  %v1991_v16 = vld [vmem:[#allocation8 + $0x58] sm:$0xff] }
  0x7c   :  { %1056 = vmatpush.bf16.msrb.mxu1 %v1651_v25  ;;  %v1611_v25 = vor.u32 %v1934_v17, %v1608_v19  ;;  %v1990_v17 = vld [vmem:[#allocation8 + $0x50] sm:$0xff] }
  0x7d   :  { %1069 = vmatpush.bf16.msrb.mxu2 %v1715_v26  ;;  %v1675_v26 = vor.u32 %v1950_v20, %v1672_v21  ;;  %v1989_v20 = vld [vmem:[#allocation8 + $0x48] sm:$0xff] }
  0x7e   :  { %1082 = vmatpush.bf16.msrb.mxu3 %v1779_v30  ;;  %v1739_v30 = vor.u32 %v1966_v22, %v1736_v23 }
  0x7f   :  { %1044 = vmatpush.bf16.msrb.mxu0 %v1579_v37  ;;  %v1539_v37 = vor.u32 %v1916_v27, %v1536_v28 }
  0x80   :  { %1057 = vmatpush.bf16.msrb.mxu1 %v1643_v38  ;;  %v1603_v38 = vor.u32 %v1932_v29, %v1600_v31 }
  0x81   :  { %1070 = vmatpush.bf16.msrb.mxu2 %v1707_v41  ;;  %v1667_v41 = vor.u32 %v1948_v32, %v1664_v33 }
  0x82   :  { %1083 = vmatpush.bf16.msrb.mxu3 %v1771_v45  ;;  %v1985_v45 = vld [vmem:[#allocation8 + $0x28] sm:$0xff] }
  0x83   :  { %1045 = vmatpush.bf16.msrb.mxu0 %v1571_v6  ;;  %v1981_v6 = vld [vmem:[#allocation8 + $0x8] sm:$0xff] }
  0x84   :  { %1058 = vmatpush.bf16.msrb.mxu1 %v1635_v50  ;;  %v212_v50 = vld [vmem:[#allocation7] sm:$0x3] }
  0x85   :  { %1071 = vmatpush.bf16.msrb.mxu2 %v1699_v15  ;;  %v214_v15 = vperm.slane %v212_v50, 0 }
  0x86   :  { %1084 = vmatpush.bf16.msrb.mxu3 %v1763_v54 }
  0x87   :  { %1046 = vmatpush.bf16.msrb.mxu0 %v1563_v60 }
  0x88   :  { %1059 = vmatpush.bf16.msrb.mxu1 %v1627_v61 }
  0x89   :  { %1072 = vmatpush.bf16.msrb.mxu2 %v1691_v62 }
  0x8a   :  { %1085 = vmatpush.bf16.msrb.mxu3 %v1755_v3 }
  0x8b   :  { %1047 = vmatpush.bf16.msrb.mxu0 %v1555_v10  ;;  %v1993_v10 = vld [vmem:[#allocation8 + $0x68] sm:$0xff] }
  0x8c   :  { %1060 = vmatpush.bf16.msrb.mxu1 %v1619_v11 }
  0x8d   :  { %1073 = vmatpush.bf16.msrb.mxu2 %v1683_v12 }
  0x8e   :  { %1086 = vmatpush.bf16.msrb.mxu3 %v1747_v18 }
  0x8f   :  { %1048 = vmatpush.bf16.msrb.mxu0 %v1547_v24  ;;  %v1988_v24 = vld [vmem:[#allocation8 + $0x40] sm:$0xff] }
  0x90   :  { %1061 = vmatpush.bf16.msrb.mxu1 %v1611_v25 }
  0x91   :  { %1074 = vmatpush.bf16.msrb.mxu2 %v1675_v26  ;;  %v215_v26 = vperm.slane %v212_v50, 1 }
  0x92   :  { %1087 = vmatpush.bf16.msrb.mxu3 %v1739_v30 }
  0x93   :  { %1049 = vmatpush.bf16.msrb.mxu0 %v1539_v37 }
  0x94   :  { %1062 = vmatpush.bf16.msrb.mxu1 %v1603_v38 }
  0x95   :  { %1075 = vmatpush.bf16.msrb.mxu2 %v1667_v41 }
  0x96   :  { %1088 = vmatpush.bf16.msrb.mxu3 %v1731_v42  ;;  %1050 = vmatmul.bf16.vlgmr.msrb.gmra.mxu0 %v2199_v39 }
  0x97   :  { %1230 = vmatpush.bf16.msra.mxu0 %v1987_v43  ;;  %1063 = vmatmul.bf16.vlgmr.msrb.gmra.mxu1 %v2203_v44 }
  0x98   :  { %1076 = vmatmul.bf16.vlgmr.msrb.gmra.mxu2 %v2197_v35  ;;  %v1980_v35 = vld [vmem:[#allocation8] sm:$0xff]  ;;  %1243 = vmatpush.bf16.msra.mxu1 %v1995_v2 }
  0x99   :  { %1089 = vmatmul.bf16.vlgmr.msrb.gmra.mxu3 %v2201_v40 }
  0x9b   :  { %1231 = vmatpush.bf16.msra.mxu0 %v1986_v1 }
  0x9c   :  { %1244 = vmatpush.bf16.msra.mxu1 %v1994_v5 }
  0x9f   :  { %1232 = vmatpush.bf16.msra.mxu0 %v1985_v45 }
  0xa0   :  { %1245 = vmatpush.bf16.msra.mxu1 %v1993_v10 }
  0xa3   :  { %1233 = vmatpush.bf16.msra.mxu0 %v1984_v46 }
  0xa4   :  { %1246 = vmatpush.bf16.msra.mxu1 %v1992_v13 }
  0xa7   :  { %1234 = vmatpush.bf16.msra.mxu0 %v1983_v47 }
  0xa8   :  { %1247 = vmatpush.bf16.msra.mxu1 %v1991_v16 }
  0xab   :  { %1235 = vmatpush.bf16.msra.mxu0 %v1982_v48 }
  0xac   :  { %1248 = vmatpush.bf16.msra.mxu1 %v1990_v17 }
  0xaf   :  { %1236 = vmatpush.bf16.msra.mxu0 %v1981_v6 }
  0xb0   :  { %1249 = vmatpush.bf16.msra.mxu1 %v1989_v20 }
  0xb3   :  { %v895_v49 = vpop.f32.mrf.mxu0  ;;  %1237 = vmatpush.bf16.msra.mxu0 %v1980_v35 }
  0xb4   :  { %v908_v14 = vpop.f32.mrf.mxu1  ;;  %v896_v52 = vadd.f32 %v895_v49, %v214_v15  ;;  %1250 = vmatpush.bf16.msra.mxu1 %v1988_v24 }
  0xb6   :  { %v909_v55 = vadd.f32 %v908_v14, %v896_v52 }
  0xbb   :  { %v921_v39 = vpop.f32.mrf.mxu2  ;;  %v897_v40 = vpop.f32.mrf.mxu0 }
  0xbc   :  { %v934_v44 = vpop.f32.mrf.mxu3  ;;  %v910_v51 = vpop.f32.mrf.mxu1  ;;  %v922_v56 = vadd.f32 %v921_v39, %v909_v55  ;;  %v2005_v39 = vld [vmem:[%s2227_s4] ss:$0 sm:$0xff] }
  0xbe   :  { %v935_v57 = vadd.f32 %v934_v44, %v922_v56 }
  0xc3   :  { %v923_v53 = vpop.f32.mrf.mxu2 }
  0xc4   :  { %v936_v54 = vpop.f32.mrf.mxu3 }
  0xd3   :  { %v947_v58 = vpop.f32.mrf.mxu0 }
  0xd4   :  { %v948_v59 = vadd.f32 %v947_v58, %v935_v57  ;;  %v960_v60 = vpop.f32.mrf.mxu1 }
  0xd6   :  { %v961_v61 = vadd.f32 %v960_v60, %v948_v59 }
  0xdb   :  { %v973_v62 = vpop.f32.mrf.mxu2  ;;  %v949_v4 = vpop.f32.mrf.mxu0 }
  0xdc   :  { %v974_v63 = vadd.f32 %v973_v62, %v961_v61  ;;  %v986_v0 = vpop.f32.mrf.mxu3  ;;  %v962_v7 = vpop.f32.mrf.mxu1 }
  0xde   :  { %v987_v3 = vadd.f32 %v986_v0, %v974_v63 }
  0xe0   :  { %v1094_v8 = vmax.f32 %v987_v3, 0.0 }
  0xe2   :  { %v1096_v9 = vpack.c.bf16 %v1094_v8, %v1094_v8 }
  0xe3   :  { %v975_v11 = vpop.f32.mrf.mxu2 }
  0xe4   :  { %1238 = vmatmul.bf16.vlgmr.msra.gmra.mxu0 %v1096_v9  ;;  %v988_v12 = vpop.f32.mrf.mxu3 }
  0xf3   :  { %v999_v18 = vpop.f32.mrf.mxu0 }
  0xf4   :  { %v1012_v19 = vpop.f32.mrf.mxu1  ;;  %v1000_v29 = vadd.f32 %v999_v18, %v215_v26 }
  0xf6   :  { %v1013_v30 = vadd.f32 %v1012_v19, %v1000_v29 }
  0xfb   :  { %v1025_v21 = vpop.f32.mrf.mxu2  ;;  %v1001_v23 = vpop.f32.mrf.mxu0 }
  0xfc   :  { %v1038_v22 = vpop.f32.mrf.mxu3  ;;  %v1014_v25 = vpop.f32.mrf.mxu1  ;;  %v1026_v31 = vadd.f32 %v1025_v21, %v1013_v30 }
  0xfe   :  { %v1039_v32 = vadd.f32 %v1038_v22, %v1026_v31 }
 0x103   :  { %v1027_v27 = vpop.f32.mrf.mxu2 }
 0x104   :  { %v1040_v28 = vpop.f32.mrf.mxu3 }
 0x113   :  { %v1051_v33 = vpop.f32.mrf.mxu0 }
 0x114   :  { %v1064_v34 = vpop.f32.mrf.mxu1  ;;  %v1052_v36 = vadd.f32 %v1051_v33, %v1039_v32 }
 0x116   :  { %v1065_v37 = vadd.f32 %v1064_v34, %v1052_v36 }
 0x11b   :  { %v1077_v38 = vpop.f32.mrf.mxu2  ;;  %v1053_v43 = vpop.f32.mrf.mxu0 }
 0x11c   :  { %v1078_v41 = vadd.f32 %v1077_v38, %v1065_v37  ;;  %v1090_v42 = vpop.f32.mrf.mxu3  ;;  %v1066_v1 = vpop.f32.mrf.mxu1 }
 0x11e   :  { %v1091_v45 = vadd.f32 %v1090_v42, %v1078_v41 }
 0x120   :  { %v1095_v46 = vmax.f32 %v1091_v45, 0.0 }
 0x122   :  { %v1097_v47 = vpack.c.bf16 %v1095_v46, %v1095_v46 }
 0x123   :  { %v1079_v48 = vpop.f32.mrf.mxu2 }
 0x124   :  { %v1092_v49 = vpop.f32.mrf.mxu3  ;;  %1251 = vmatmul.bf16.vlgmr.msra.gmra.mxu1 %v1097_v47 }
 0x161   :  { %v1239_v14 = vpop.f32.mrf.mxu0 }
 0x162   :  { %v1240_v50 = vadd.f32 %v2005_v39, %v1239_v14 }
 0x169   :  { %v1241_v6 = vpop.f32.mrf.mxu0 }
 0x1a1   :  { %v1252_v44 = vpop.f32.mrf.mxu1 }
 0x1a2   :  { %v1253_v35 = vadd.f32 %v1252_v44, %v1240_v50 }
 0x1a4   :  { %1256 = vst [vmem:[#allocation10] sm:$0xff] %v1253_v35 }
 0x1a5   :  { %1267 = dma.vmem_to_hbm [thread:$0]  %s1263_s16, 128, %s1265_s19, [#allocation4]  }
 0x1a9   :  { %v1254_v15 = vpop.f32.mrf.mxu1 }
 0x1aa   :  { %2132 = dma.done.wait [#allocation4], 128  }
 0x1ab   :  { %2133 = vsyncadd [#allocation4], 4294967168 }
 0x1ac   :  { %1272 = vsyncpa [#allocation3], 1 }
 0x1ad   :  { %1273 = vsyncpa [#allocation6], 1 }
 0x1ae   :  { %1274 = vsyncpa [#allocation9], 1 }
 0x1af   :  { %1275 = vsyncpa [#allocation4], 1 }

</bundles_post_ra>
